<compile_context>
chip_gen: v6e
topology: v6e:2x2x1
jax: 0.10.0
libtpu: 0.0.40
codegen_flags: <defaults>
</compile_context>

<pallas_src>
import jax
import jax.numpy as jnp
from jax import lax
from jax.experimental import pallas as pl
from jax.experimental.pallas import tpu as pltpu


_NUM_CHAINS = 4          # independent select chains (feeds the 4 VALU slots)
_LANES = 128             # lane-dense output width
_TOKEN_PAD = -1          # pad code for flattening; maps to -1 (OOV) and is sliced off
_VOCAB_PAD = -2          # pad code for the vocab table; never matches any input


def _vocab_lookup_kernel(vocab_ref, x_ref, o_ref):
    """vocab_ref: SMEM (Vp,) int32 token codes (index i == token id i), Vp % _NUM_CHAINS == 0.
    x_ref:     VMEM (block_rows, 128) int32 input token codes.
    o_ref:     VMEM (block_rows, 128) int32 output token ids (-1 on miss).
    """
    vp = vocab_ref.shape[0]
    x = x_ref[...]
    miss = jnp.full_like(x, -1)

    def body(j, accs):
        base = j * _NUM_CHAINS
        # _NUM_CHAINS independent cmp+select chains -> no single serialized
        # loop-carried dependency; SMEM scalar loads co-issue with VPU compares.
        return tuple(
            jnp.where(x == vocab_ref[base + k], base + k, acc)
            for k, acc in enumerate(accs)
        )

    n_steps = vp // _NUM_CHAINS
    accs = lax.fori_loop(
        0, n_steps, body, (miss,) * _NUM_CHAINS,
        unroll=True if n_steps <= 64 else 8,
    )

    # Combine chains: misses are -1 and vocab codes are unique, so max picks
    # the single hit (same semantics as the overwrite loop).
    out = accs[0]
    for a in accs[1:]:
        out = jnp.maximum(out, a)
    o_ref[...] = out


def _choose_block_rows(rows_total: int, max_block_rows: int) -> int:
    """Pick a row-block size: multiple of 8, as large as sensible, but keep
    >= 2 grid blocks when the input allows (v7x has 2 TensorCores)."""
    if rows_total <= 8:
        return 8
    target = min(max_block_rows, rows_total)
    if target == rows_total and rows_total >= 16:
        target = rows_total // 2
    return max(8, (target // 8) * 8)


def vocab_transform(tokens: jax.Array, vocab_codes: jax.Array,
                    *, max_block_rows: int = 512) -> jax.Array:
    """Pallas equivalent of VocabTransform.forward on a padded token-code batch.

    tokens:      int32 array of any shape (e.g. (B, L) padded List[List[str]]).
    vocab_codes: int32 array (V,), vocab_codes[i] = code of the token with id i.
    returns:     int32 array, same shape as `tokens`, token ids (-1 for OOV).
    """
    orig_shape = tokens.shape
    tokens = tokens.astype(jnp.int32)
    vocab_codes = vocab_codes.astype(jnp.int32)
    v = vocab_codes.shape[0]

    # Pad the vocab table to a multiple of the chain count with a sentinel
    # code that can never match an input token.
    vp = pl.cdiv(v, _NUM_CHAINS) * _NUM_CHAINS
    if vp != v:
        vocab_codes = jnp.pad(vocab_codes, (0, vp - v),
                              constant_values=_VOCAB_PAD)

    # Flatten and re-tile lane-dense: (rows, 128) with large row blocks.
    flat = tokens.reshape(-1)
    n = flat.shape[0]
    rows = pl.cdiv(n, _LANES)
    block_rows = _choose_block_rows(rows, max_block_rows)
    padded_rows = pl.cdiv(rows, block_rows) * block_rows
    pad = padded_rows * _LANES - n
    if pad:
        flat = jnp.pad(flat, (0, pad), constant_values=_TOKEN_PAD)
    x2d = flat.reshape(padded_rows, _LANES)

    grid = (padded_rows // block_rows,)
    out2d = pl.pallas_call(
        _vocab_lookup_kernel,
        out_shape=jax.ShapeDtypeStruct((padded_rows, _LANES), jnp.int32),
        grid=grid,
        in_specs=[
            pl.BlockSpec(memory_space=pltpu.MemorySpace.SMEM),       # vocab table
            pl.BlockSpec((block_rows, _LANES), lambda i: (i, 0)),    # token slab
        ],
        out_specs=pl.BlockSpec((block_rows, _LANES), lambda i: (i, 0)),
        compiler_params=pltpu.CompilerParams(
            dimension_semantics=("parallel",),
            vmem_limit_bytes=32 << 20,   # safe on v5e's 16 MiB default scoped limit
        ),
    )(vocab_codes, x2d)

    return out2d.reshape(-1)[: n].reshape(orig_shape)


if __name__ == "__main__":
    key = jax.random.PRNGKey(0)

    V = 37            # vocab size (non-multiple of 4 to exercise table padding)
    B, L = 16, 128    # batch of 16 "sentences", 128 tokens each (padded)

    # Deterministic synthetic vocab: unique positive int32 token codes (the
    # stand-in for the string tokens held by a torchtext Vocab).
    # vocab_codes[i] is the code of the token whose id is i.
    vocab_codes = jnp.arange(V, dtype=jnp.int32) * 100003 + 7

    # Build an input batch whose tokens are all in-vocab: draw ids, then map
    # to their codes (this is "the strings the user passes in").
    key, sub = jax.random.split(key)
    true_ids = jax.random.randint(sub, (B, L), 0, V, dtype=jnp.int32)
    tokens = vocab_codes[true_ids]

    out = vocab_transform(tokens, vocab_codes)
    out = jax.block_until_ready(out)

    # Reference: lookup_indices == recover the original ids.
    assert out.dtype == jnp.int32
    assert out.shape == (B, L)
    assert bool(jnp.all(out == true_ids))

    print("KERNEL_OK")
</pallas_src>

<mosaic_0001>
module attributes {stable_mosaic.version = 11 : i64} {
  func.func @_vocab_lookup_kernel(%arg0: i32, %arg1: memref<40xi32, #tpu.memory_space<smem>>, %arg2: memref<8x128xi32, #tpu.memory_space<vmem>>, %arg3: memref<8x128xi32, #tpu.memory_space<vmem>>) attributes {dimension_semantics = [#tpu.dimension_semantics<parallel>], iteration_bounds = array<i64: 2>, scalar_prefetch = 0 : i64, scratch_operands = 0 : i64, tpu.core_type = #tpu.core_type<tc>, window_params = [{transform_indices = @transform_0, window_bounds = array<i64: 40>}, {transform_indices = @transform_1, window_bounds = array<i64: 8, 128>}, {transform_indices = @transform_2, window_bounds = array<i64: 8, 128>}]} {
    %c0 = arith.constant 0 : index
    %c0_0 = arith.constant 0 : index
    %0 = vector.load %arg2[%c0, %c0_0] : memref<8x128xi32, #tpu.memory_space<vmem>>, vector<8x128xi32>
    %c-1_i32 = arith.constant -1 : i32
    %1 = vector.broadcast %c-1_i32 : i32 to vector<8x128xi32>
    %c0_i32 = arith.constant 0 : i32
    %c4_i32 = arith.constant 4 : i32
    %2 = arith.muli %c0_i32, %c4_i32 : i32
    %c0_i32_1 = arith.constant 0 : i32
    %3 = arith.addi %2, %c0_i32_1 : i32
    %4 = arith.index_cast %3 : i32 to index
    %5 = memref.load %arg1[%4] : memref<40xi32, #tpu.memory_space<smem>>
    %6 = vector.broadcast %5 : i32 to vector<8x128xi32>
    %7 = arith.cmpi eq, %0, %6 : vector<8x128xi32>
    %c0_i32_2 = arith.constant 0 : i32
    %8 = arith.addi %2, %c0_i32_2 : i32
    %9 = vector.broadcast %8 : i32 to vector<8x128xi32>
    %10 = arith.select %7, %9, %1 : vector<8x128xi1>, vector<8x128xi32>
    %c1_i32 = arith.constant 1 : i32
    %11 = arith.addi %2, %c1_i32 : i32
    %12 = arith.index_cast %11 : i32 to index
    %13 = memref.load %arg1[%12] : memref<40xi32, #tpu.memory_space<smem>>
    %14 = vector.broadcast %13 : i32 to vector<8x128xi32>
    %15 = arith.cmpi eq, %0, %14 : vector<8x128xi32>
    %c1_i32_3 = arith.constant 1 : i32
    %16 = arith.addi %2, %c1_i32_3 : i32
    %17 = vector.broadcast %16 : i32 to vector<8x128xi32>
    %18 = arith.select %15, %17, %1 : vector<8x128xi1>, vector<8x128xi32>
    %c2_i32 = arith.constant 2 : i32
    %19 = arith.addi %2, %c2_i32 : i32
    %20 = arith.index_cast %19 : i32 to index
    %21 = memref.load %arg1[%20] : memref<40xi32, #tpu.memory_space<smem>>
    %22 = vector.broadcast %21 : i32 to vector<8x128xi32>
    %23 = arith.cmpi eq, %0, %22 : vector<8x128xi32>
    %c2_i32_4 = arith.constant 2 : i32
    %24 = arith.addi %2, %c2_i32_4 : i32
    %25 = vector.broadcast %24 : i32 to vector<8x128xi32>
    %26 = arith.select %23, %25, %1 : vector<8x128xi1>, vector<8x128xi32>
    %c3_i32 = arith.constant 3 : i32
    %27 = arith.addi %2, %c3_i32 : i32
    %28 = arith.index_cast %27 : i32 to index
    %29 = memref.load %arg1[%28] : memref<40xi32, #tpu.memory_space<smem>>
    %30 = vector.broadcast %29 : i32 to vector<8x128xi32>
    %31 = arith.cmpi eq, %0, %30 : vector<8x128xi32>
    %c3_i32_5 = arith.constant 3 : i32
    %32 = arith.addi %2, %c3_i32_5 : i32
    %33 = vector.broadcast %32 : i32 to vector<8x128xi32>
    %34 = arith.select %31, %33, %1 : vector<8x128xi1>, vector<8x128xi32>
    %c1_i32_6 = arith.constant 1 : i32
    %c4_i32_7 = arith.constant 4 : i32
    %35 = arith.muli %c1_i32_6, %c4_i32_7 : i32
    %c0_i32_8 = arith.constant 0 : i32
    %36 = arith.addi %35, %c0_i32_8 : i32
    %37 = arith.index_cast %36 : i32 to index
    %38 = memref.load %arg1[%37] : memref<40xi32, #tpu.memory_space<smem>>
    %39 = vector.broadcast %38 : i32 to vector<8x128xi32>
    %40 = arith.cmpi eq, %0, %39 : vector<8x128xi32>
    %c0_i32_9 = arith.constant 0 : i32
    %41 = arith.addi %35, %c0_i32_9 : i32
    %42 = vector.broadcast %41 : i32 to vector<8x128xi32>
    %43 = arith.select %40, %42, %10 : vector<8x128xi1>, vector<8x128xi32>
    %c1_i32_10 = arith.constant 1 : i32
    %44 = arith.addi %35, %c1_i32_10 : i32
    %45 = arith.index_cast %44 : i32 to index
    %46 = memref.load %arg1[%45] : memref<40xi32, #tpu.memory_space<smem>>
    %47 = vector.broadcast %46 : i32 to vector<8x128xi32>
    %48 = arith.cmpi eq, %0, %47 : vector<8x128xi32>
    %c1_i32_11 = arith.constant 1 : i32
    %49 = arith.addi %35, %c1_i32_11 : i32
    %50 = vector.broadcast %49 : i32 to vector<8x128xi32>
    %51 = arith.select %48, %50, %18 : vector<8x128xi1>, vector<8x128xi32>
    %c2_i32_12 = arith.constant 2 : i32
    %52 = arith.addi %35, %c2_i32_12 : i32
    %53 = arith.index_cast %52 : i32 to index
    %54 = memref.load %arg1[%53] : memref<40xi32, #tpu.memory_space<smem>>
    %55 = vector.broadcast %54 : i32 to vector<8x128xi32>
    %56 = arith.cmpi eq, %0, %55 : vector<8x128xi32>
    %c2_i32_13 = arith.constant 2 : i32
    %57 = arith.addi %35, %c2_i32_13 : i32
    %58 = vector.broadcast %57 : i32 to vector<8x128xi32>
    %59 = arith.select %56, %58, %26 : vector<8x128xi1>, vector<8x128xi32>
    %c3_i32_14 = arith.constant 3 : i32
    %60 = arith.addi %35, %c3_i32_14 : i32
    %61 = arith.index_cast %60 : i32 to index
    %62 = memref.load %arg1[%61] : memref<40xi32, #tpu.memory_space<smem>>
    %63 = vector.broadcast %62 : i32 to vector<8x128xi32>
    %64 = arith.cmpi eq, %0, %63 : vector<8x128xi32>
    %c3_i32_15 = arith.constant 3 : i32
    %65 = arith.addi %35, %c3_i32_15 : i32
    %66 = vector.broadcast %65 : i32 to vector<8x128xi32>
    %67 = arith.select %64, %66, %34 : vector<8x128xi1>, vector<8x128xi32>
    %c2_i32_16 = arith.constant 2 : i32
    %c4_i32_17 = arith.constant 4 : i32
    %68 = arith.muli %c2_i32_16, %c4_i32_17 : i32
    %c0_i32_18 = arith.constant 0 : i32
    %69 = arith.addi %68, %c0_i32_18 : i32
    %70 = arith.index_cast %69 : i32 to index
    %71 = memref.load %arg1[%70] : memref<40xi32, #tpu.memory_space<smem>>
    %72 = vector.broadcast %71 : i32 to vector<8x128xi32>
    %73 = arith.cmpi eq, %0, %72 : vector<8x128xi32>
    %c0_i32_19 = arith.constant 0 : i32
    %74 = arith.addi %68, %c0_i32_19 : i32
    %75 = vector.broadcast %74 : i32 to vector<8x128xi32>
    %76 = arith.select %73, %75, %43 : vector<8x128xi1>, vector<8x128xi32>
    %c1_i32_20 = arith.constant 1 : i32
    %77 = arith.addi %68, %c1_i32_20 : i32
    %78 = arith.index_cast %77 : i32 to index
    %79 = memref.load %arg1[%78] : memref<40xi32, #tpu.memory_space<smem>>
    %80 = vector.broadcast %79 : i32 to vector<8x128xi32>
    %81 = arith.cmpi eq, %0, %80 : vector<8x128xi32>
    %c1_i32_21 = arith.constant 1 : i32
    %82 = arith.addi %68, %c1_i32_21 : i32
    %83 = vector.broadcast %82 : i32 to vector<8x128xi32>
    %84 = arith.select %81, %83, %51 : vector<8x128xi1>, vector<8x128xi32>
    %c2_i32_22 = arith.constant 2 : i32
    %85 = arith.addi %68, %c2_i32_22 : i32
    %86 = arith.index_cast %85 : i32 to index
    %87 = memref.load %arg1[%86] : memref<40xi32, #tpu.memory_space<smem>>
    %88 = vector.broadcast %87 : i32 to vector<8x128xi32>
    %89 = arith.cmpi eq, %0, %88 : vector<8x128xi32>
    %c2_i32_23 = arith.constant 2 : i32
    %90 = arith.addi %68, %c2_i32_23 : i32
    %91 = vector.broadcast %90 : i32 to vector<8x128xi32>
    %92 = arith.select %89, %91, %59 : vector<8x128xi1>, vector<8x128xi32>
    %c3_i32_24 = arith.constant 3 : i32
    %93 = arith.addi %68, %c3_i32_24 : i32
    %94 = arith.index_cast %93 : i32 to index
    %95 = memref.load %arg1[%94] : memref<40xi32, #tpu.memory_space<smem>>
    %96 = vector.broadcast %95 : i32 to vector<8x128xi32>
    %97 = arith.cmpi eq, %0, %96 : vector<8x128xi32>
    %c3_i32_25 = arith.constant 3 : i32
    %98 = arith.addi %68, %c3_i32_25 : i32
    %99 = vector.broadcast %98 : i32 to vector<8x128xi32>
    %100 = arith.select %97, %99, %67 : vector<8x128xi1>, vector<8x128xi32>
    %c3_i32_26 = arith.constant 3 : i32
    %c4_i32_27 = arith.constant 4 : i32
    %101 = arith.muli %c3_i32_26, %c4_i32_27 : i32
    %c0_i32_28 = arith.constant 0 : i32
    %102 = arith.addi %101, %c0_i32_28 : i32
    %103 = arith.index_cast %102 : i32 to index
    %104 = memref.load %arg1[%103] : memref<40xi32, #tpu.memory_space<smem>>
    %105 = vector.broadcast %104 : i32 to vector<8x128xi32>
    %106 = arith.cmpi eq, %0, %105 : vector<8x128xi32>
    %c0_i32_29 = arith.constant 0 : i32
    %107 = arith.addi %101, %c0_i32_29 : i32
    %108 = vector.broadcast %107 : i32 to vector<8x128xi32>
    %109 = arith.select %106, %108, %76 : vector<8x128xi1>, vector<8x128xi32>
    %c1_i32_30 = arith.constant 1 : i32
    %110 = arith.addi %101, %c1_i32_30 : i32
    %111 = arith.index_cast %110 : i32 to index
    %112 = memref.load %arg1[%111] : memref<40xi32, #tpu.memory_space<smem>>
    %113 = vector.broadcast %112 : i32 to vector<8x128xi32>
    %114 = arith.cmpi eq, %0, %113 : vector<8x128xi32>
    %c1_i32_31 = arith.constant 1 : i32
    %115 = arith.addi %101, %c1_i32_31 : i32
    %116 = vector.broadcast %115 : i32 to vector<8x128xi32>
    %117 = arith.select %114, %116, %84 : vector<8x128xi1>, vector<8x128xi32>
    %c2_i32_32 = arith.constant 2 : i32
    %118 = arith.addi %101, %c2_i32_32 : i32
    %119 = arith.index_cast %118 : i32 to index
    %120 = memref.load %arg1[%119] : memref<40xi32, #tpu.memory_space<smem>>
    %121 = vector.broadcast %120 : i32 to vector<8x128xi32>
    %122 = arith.cmpi eq, %0, %121 : vector<8x128xi32>
    %c2_i32_33 = arith.constant 2 : i32
    %123 = arith.addi %101, %c2_i32_33 : i32
    %124 = vector.broadcast %123 : i32 to vector<8x128xi32>
    %125 = arith.select %122, %124, %92 : vector<8x128xi1>, vector<8x128xi32>
    %c3_i32_34 = arith.constant 3 : i32
    %126 = arith.addi %101, %c3_i32_34 : i32
    %127 = arith.index_cast %126 : i32 to index
    %128 = memref.load %arg1[%127] : memref<40xi32, #tpu.memory_space<smem>>
    %129 = vector.broadcast %128 : i32 to vector<8x128xi32>
    %130 = arith.cmpi eq, %0, %129 : vector<8x128xi32>
    %c3_i32_35 = arith.constant 3 : i32
    %131 = arith.addi %101, %c3_i32_35 : i32
    %132 = vector.broadcast %131 : i32 to vector<8x128xi32>
    %133 = arith.select %130, %132, %100 : vector<8x128xi1>, vector<8x128xi32>
    %c4_i32_36 = arith.constant 4 : i32
    %c4_i32_37 = arith.constant 4 : i32
    %134 = arith.muli %c4_i32_36, %c4_i32_37 : i32
    %c0_i32_38 = arith.constant 0 : i32
    %135 = arith.addi %134, %c0_i32_38 : i32
    %136 = arith.index_cast %135 : i32 to index
    %137 = memref.load %arg1[%136] : memref<40xi32, #tpu.memory_space<smem>>
    %138 = vector.broadcast %137 : i32 to vector<8x128xi32>
    %139 = arith.cmpi eq, %0, %138 : vector<8x128xi32>
    %c0_i32_39 = arith.constant 0 : i32
    %140 = arith.addi %134, %c0_i32_39 : i32
    %141 = vector.broadcast %140 : i32 to vector<8x128xi32>
    %142 = arith.select %139, %141, %109 : vector<8x128xi1>, vector<8x128xi32>
    %c1_i32_40 = arith.constant 1 : i32
    %143 = arith.addi %134, %c1_i32_40 : i32
    %144 = arith.index_cast %143 : i32 to index
    %145 = memref.load %arg1[%144] : memref<40xi32, #tpu.memory_space<smem>>
    %146 = vector.broadcast %145 : i32 to vector<8x128xi32>
    %147 = arith.cmpi eq, %0, %146 : vector<8x128xi32>
    %c1_i32_41 = arith.constant 1 : i32
    %148 = arith.addi %134, %c1_i32_41 : i32
    %149 = vector.broadcast %148 : i32 to vector<8x128xi32>
    %150 = arith.select %147, %149, %117 : vector<8x128xi1>, vector<8x128xi32>
    %c2_i32_42 = arith.constant 2 : i32
    %151 = arith.addi %134, %c2_i32_42 : i32
    %152 = arith.index_cast %151 : i32 to index
    %153 = memref.load %arg1[%152] : memref<40xi32, #tpu.memory_space<smem>>
    %154 = vector.broadcast %153 : i32 to vector<8x128xi32>
    %155 = arith.cmpi eq, %0, %154 : vector<8x128xi32>
    %c2_i32_43 = arith.constant 2 : i32
    %156 = arith.addi %134, %c2_i32_43 : i32
    %157 = vector.broadcast %156 : i32 to vector<8x128xi32>
    %158 = arith.select %155, %157, %125 : vector<8x128xi1>, vector<8x128xi32>
    %c3_i32_44 = arith.constant 3 : i32
    %159 = arith.addi %134, %c3_i32_44 : i32
    %160 = arith.index_cast %159 : i32 to index
    %161 = memref.load %arg1[%160] : memref<40xi32, #tpu.memory_space<smem>>
    %162 = vector.broadcast %161 : i32 to vector<8x128xi32>
    %163 = arith.cmpi eq, %0, %162 : vector<8x128xi32>
    %c3_i32_45 = arith.constant 3 : i32
    %164 = arith.addi %134, %c3_i32_45 : i32
    %165 = vector.broadcast %164 : i32 to vector<8x128xi32>
    %166 = arith.select %163, %165, %133 : vector<8x128xi1>, vector<8x128xi32>
    %c5_i32 = arith.constant 5 : i32
    %c4_i32_46 = arith.constant 4 : i32
    %167 = arith.muli %c5_i32, %c4_i32_46 : i32
    %c0_i32_47 = arith.constant 0 : i32
    %168 = arith.addi %167, %c0_i32_47 : i32
    %169 = arith.index_cast %168 : i32 to index
    %170 = memref.load %arg1[%169] : memref<40xi32, #tpu.memory_space<smem>>
    %171 = vector.broadcast %170 : i32 to vector<8x128xi32>
    %172 = arith.cmpi eq, %0, %171 : vector<8x128xi32>
    %c0_i32_48 = arith.constant 0 : i32
    %173 = arith.addi %167, %c0_i32_48 : i32
    %174 = vector.broadcast %173 : i32 to vector<8x128xi32>
    %175 = arith.select %172, %174, %142 : vector<8x128xi1>, vector<8x128xi32>
    %c1_i32_49 = arith.constant 1 : i32
    %176 = arith.addi %167, %c1_i32_49 : i32
    %177 = arith.index_cast %176 : i32 to index
    %178 = memref.load %arg1[%177] : memref<40xi32, #tpu.memory_space<smem>>
    %179 = vector.broadcast %178 : i32 to vector<8x128xi32>
    %180 = arith.cmpi eq, %0, %179 : vector<8x128xi32>
    %c1_i32_50 = arith.constant 1 : i32
    %181 = arith.addi %167, %c1_i32_50 : i32
    %182 = vector.broadcast %181 : i32 to vector<8x128xi32>
    %183 = arith.select %180, %182, %150 : vector<8x128xi1>, vector<8x128xi32>
    %c2_i32_51 = arith.constant 2 : i32
    %184 = arith.addi %167, %c2_i32_51 : i32
    %185 = arith.index_cast %184 : i32 to index
    %186 = memref.load %arg1[%185] : memref<40xi32, #tpu.memory_space<smem>>
    %187 = vector.broadcast %186 : i32 to vector<8x128xi32>
    %188 = arith.cmpi eq, %0, %187 : vector<8x128xi32>
    %c2_i32_52 = arith.constant 2 : i32
    %189 = arith.addi %167, %c2_i32_52 : i32
    %190 = vector.broadcast %189 : i32 to vector<8x128xi32>
    %191 = arith.select %188, %190, %158 : vector<8x128xi1>, vector<8x128xi32>
    %c3_i32_53 = arith.constant 3 : i32
    %192 = arith.addi %167, %c3_i32_53 : i32
    %193 = arith.index_cast %192 : i32 to index
    %194 = memref.load %arg1[%193] : memref<40xi32, #tpu.memory_space<smem>>
    %195 = vector.broadcast %194 : i32 to vector<8x128xi32>
    %196 = arith.cmpi eq, %0, %195 : vector<8x128xi32>
    %c3_i32_54 = arith.constant 3 : i32
    %197 = arith.addi %167, %c3_i32_54 : i32
    %198 = vector.broadcast %197 : i32 to vector<8x128xi32>
    %199 = arith.select %196, %198, %166 : vector<8x128xi1>, vector<8x128xi32>
    %c6_i32 = arith.constant 6 : i32
    %c4_i32_55 = arith.constant 4 : i32
    %200 = arith.muli %c6_i32, %c4_i32_55 : i32
    %c0_i32_56 = arith.constant 0 : i32
    %201 = arith.addi %200, %c0_i32_56 : i32
    %202 = arith.index_cast %201 : i32 to index
    %203 = memref.load %arg1[%202] : memref<40xi32, #tpu.memory_space<smem>>
    %204 = vector.broadcast %203 : i32 to vector<8x128xi32>
    %205 = arith.cmpi eq, %0, %204 : vector<8x128xi32>
    %c0_i32_57 = arith.constant 0 : i32
    %206 = arith.addi %200, %c0_i32_57 : i32
    %207 = vector.broadcast %206 : i32 to vector<8x128xi32>
    %208 = arith.select %205, %207, %175 : vector<8x128xi1>, vector<8x128xi32>
    %c1_i32_58 = arith.constant 1 : i32
    %209 = arith.addi %200, %c1_i32_58 : i32
    %210 = arith.index_cast %209 : i32 to index
    %211 = memref.load %arg1[%210] : memref<40xi32, #tpu.memory_space<smem>>
    %212 = vector.broadcast %211 : i32 to vector<8x128xi32>
    %213 = arith.cmpi eq, %0, %212 : vector<8x128xi32>
    %c1_i32_59 = arith.constant 1 : i32
    %214 = arith.addi %200, %c1_i32_59 : i32
    %215 = vector.broadcast %214 : i32 to vector<8x128xi32>
    %216 = arith.select %213, %215, %183 : vector<8x128xi1>, vector<8x128xi32>
    %c2_i32_60 = arith.constant 2 : i32
    %217 = arith.addi %200, %c2_i32_60 : i32
    %218 = arith.index_cast %217 : i32 to index
    %219 = memref.load %arg1[%218] : memref<40xi32, #tpu.memory_space<smem>>
    %220 = vector.broadcast %219 : i32 to vector<8x128xi32>
    %221 = arith.cmpi eq, %0, %220 : vector<8x128xi32>
    %c2_i32_61 = arith.constant 2 : i32
    %222 = arith.addi %200, %c2_i32_61 : i32
    %223 = vector.broadcast %222 : i32 to vector<8x128xi32>
    %224 = arith.select %221, %223, %191 : vector<8x128xi1>, vector<8x128xi32>
    %c3_i32_62 = arith.constant 3 : i32
    %225 = arith.addi %200, %c3_i32_62 : i32
    %226 = arith.index_cast %225 : i32 to index
    %227 = memref.load %arg1[%226] : memref<40xi32, #tpu.memory_space<smem>>
    %228 = vector.broadcast %227 : i32 to vector<8x128xi32>
    %229 = arith.cmpi eq, %0, %228 : vector<8x128xi32>
    %c3_i32_63 = arith.constant 3 : i32
    %230 = arith.addi %200, %c3_i32_63 : i32
    %231 = vector.broadcast %230 : i32 to vector<8x128xi32>
    %232 = arith.select %229, %231, %199 : vector<8x128xi1>, vector<8x128xi32>
    %c7_i32 = arith.constant 7 : i32
    %c4_i32_64 = arith.constant 4 : i32
    %233 = arith.muli %c7_i32, %c4_i32_64 : i32
    %c0_i32_65 = arith.constant 0 : i32
    %234 = arith.addi %233, %c0_i32_65 : i32
    %235 = arith.index_cast %234 : i32 to index
    %236 = memref.load %arg1[%235] : memref<40xi32, #tpu.memory_space<smem>>
    %237 = vector.broadcast %236 : i32 to vector<8x128xi32>
    %238 = arith.cmpi eq, %0, %237 : vector<8x128xi32>
    %c0_i32_66 = arith.constant 0 : i32
    %239 = arith.addi %233, %c0_i32_66 : i32
    %240 = vector.broadcast %239 : i32 to vector<8x128xi32>
    %241 = arith.select %238, %240, %208 : vector<8x128xi1>, vector<8x128xi32>
    %c1_i32_67 = arith.constant 1 : i32
    %242 = arith.addi %233, %c1_i32_67 : i32
    %243 = arith.index_cast %242 : i32 to index
    %244 = memref.load %arg1[%243] : memref<40xi32, #tpu.memory_space<smem>>
    %245 = vector.broadcast %244 : i32 to vector<8x128xi32>
    %246 = arith.cmpi eq, %0, %245 : vector<8x128xi32>
    %c1_i32_68 = arith.constant 1 : i32
    %247 = arith.addi %233, %c1_i32_68 : i32
    %248 = vector.broadcast %247 : i32 to vector<8x128xi32>
    %249 = arith.select %246, %248, %216 : vector<8x128xi1>, vector<8x128xi32>
    %c2_i32_69 = arith.constant 2 : i32
    %250 = arith.addi %233, %c2_i32_69 : i32
    %251 = arith.index_cast %250 : i32 to index
    %252 = memref.load %arg1[%251] : memref<40xi32, #tpu.memory_space<smem>>
    %253 = vector.broadcast %252 : i32 to vector<8x128xi32>
    %254 = arith.cmpi eq, %0, %253 : vector<8x128xi32>
    %c2_i32_70 = arith.constant 2 : i32
    %255 = arith.addi %233, %c2_i32_70 : i32
    %256 = vector.broadcast %255 : i32 to vector<8x128xi32>
    %257 = arith.select %254, %256, %224 : vector<8x128xi1>, vector<8x128xi32>
    %c3_i32_71 = arith.constant 3 : i32
    %258 = arith.addi %233, %c3_i32_71 : i32
    %259 = arith.index_cast %258 : i32 to index
    %260 = memref.load %arg1[%259] : memref<40xi32, #tpu.memory_space<smem>>
    %261 = vector.broadcast %260 : i32 to vector<8x128xi32>
    %262 = arith.cmpi eq, %0, %261 : vector<8x128xi32>
    %c3_i32_72 = arith.constant 3 : i32
    %263 = arith.addi %233, %c3_i32_72 : i32
    %264 = vector.broadcast %263 : i32 to vector<8x128xi32>
    %265 = arith.select %262, %264, %232 : vector<8x128xi1>, vector<8x128xi32>
    %c8_i32 = arith.constant 8 : i32
    %c4_i32_73 = arith.constant 4 : i32
    %266 = arith.muli %c8_i32, %c4_i32_73 : i32
    %c0_i32_74 = arith.constant 0 : i32
    %267 = arith.addi %266, %c0_i32_74 : i32
    %268 = arith.index_cast %267 : i32 to index
    %269 = memref.load %arg1[%268] : memref<40xi32, #tpu.memory_space<smem>>
    %270 = vector.broadcast %269 : i32 to vector<8x128xi32>
    %271 = arith.cmpi eq, %0, %270 : vector<8x128xi32>
    %c0_i32_75 = arith.constant 0 : i32
    %272 = arith.addi %266, %c0_i32_75 : i32
    %273 = vector.broadcast %272 : i32 to vector<8x128xi32>
    %274 = arith.select %271, %273, %241 : vector<8x128xi1>, vector<8x128xi32>
    %c1_i32_76 = arith.constant 1 : i32
    %275 = arith.addi %266, %c1_i32_76 : i32
    %276 = arith.index_cast %275 : i32 to index
    %277 = memref.load %arg1[%276] : memref<40xi32, #tpu.memory_space<smem>>
    %278 = vector.broadcast %277 : i32 to vector<8x128xi32>
    %279 = arith.cmpi eq, %0, %278 : vector<8x128xi32>
    %c1_i32_77 = arith.constant 1 : i32
    %280 = arith.addi %266, %c1_i32_77 : i32
    %281 = vector.broadcast %280 : i32 to vector<8x128xi32>
    %282 = arith.select %279, %281, %249 : vector<8x128xi1>, vector<8x128xi32>
    %c2_i32_78 = arith.constant 2 : i32
    %283 = arith.addi %266, %c2_i32_78 : i32
    %284 = arith.index_cast %283 : i32 to index
    %285 = memref.load %arg1[%284] : memref<40xi32, #tpu.memory_space<smem>>
    %286 = vector.broadcast %285 : i32 to vector<8x128xi32>
    %287 = arith.cmpi eq, %0, %286 : vector<8x128xi32>
    %c2_i32_79 = arith.constant 2 : i32
    %288 = arith.addi %266, %c2_i32_79 : i32
    %289 = vector.broadcast %288 : i32 to vector<8x128xi32>
    %290 = arith.select %287, %289, %257 : vector<8x128xi1>, vector<8x128xi32>
    %c3_i32_80 = arith.constant 3 : i32
    %291 = arith.addi %266, %c3_i32_80 : i32
    %292 = arith.index_cast %291 : i32 to index
    %293 = memref.load %arg1[%292] : memref<40xi32, #tpu.memory_space<smem>>
    %294 = vector.broadcast %293 : i32 to vector<8x128xi32>
    %295 = arith.cmpi eq, %0, %294 : vector<8x128xi32>
    %c3_i32_81 = arith.constant 3 : i32
    %296 = arith.addi %266, %c3_i32_81 : i32
    %297 = vector.broadcast %296 : i32 to vector<8x128xi32>
    %298 = arith.select %295, %297, %265 : vector<8x128xi1>, vector<8x128xi32>
    %c9_i32 = arith.constant 9 : i32
    %c4_i32_82 = arith.constant 4 : i32
    %299 = arith.muli %c9_i32, %c4_i32_82 : i32
    %c0_i32_83 = arith.constant 0 : i32
    %300 = arith.addi %299, %c0_i32_83 : i32
    %301 = arith.index_cast %300 : i32 to index
    %302 = memref.load %arg1[%301] : memref<40xi32, #tpu.memory_space<smem>>
    %303 = vector.broadcast %302 : i32 to vector<8x128xi32>
    %304 = arith.cmpi eq, %0, %303 : vector<8x128xi32>
    %c0_i32_84 = arith.constant 0 : i32
    %305 = arith.addi %299, %c0_i32_84 : i32
    %306 = vector.broadcast %305 : i32 to vector<8x128xi32>
    %307 = arith.select %304, %306, %274 : vector<8x128xi1>, vector<8x128xi32>
    %c1_i32_85 = arith.constant 1 : i32
    %308 = arith.addi %299, %c1_i32_85 : i32
    %309 = arith.index_cast %308 : i32 to index
    %310 = memref.load %arg1[%309] : memref<40xi32, #tpu.memory_space<smem>>
    %311 = vector.broadcast %310 : i32 to vector<8x128xi32>
    %312 = arith.cmpi eq, %0, %311 : vector<8x128xi32>
    %c1_i32_86 = arith.constant 1 : i32
    %313 = arith.addi %299, %c1_i32_86 : i32
    %314 = vector.broadcast %313 : i32 to vector<8x128xi32>
    %315 = arith.select %312, %314, %282 : vector<8x128xi1>, vector<8x128xi32>
    %c2_i32_87 = arith.constant 2 : i32
    %316 = arith.addi %299, %c2_i32_87 : i32
    %317 = arith.index_cast %316 : i32 to index
    %318 = memref.load %arg1[%317] : memref<40xi32, #tpu.memory_space<smem>>
    %319 = vector.broadcast %318 : i32 to vector<8x128xi32>
    %320 = arith.cmpi eq, %0, %319 : vector<8x128xi32>
    %c2_i32_88 = arith.constant 2 : i32
    %321 = arith.addi %299, %c2_i32_88 : i32
    %322 = vector.broadcast %321 : i32 to vector<8x128xi32>
    %323 = arith.select %320, %322, %290 : vector<8x128xi1>, vector<8x128xi32>
    %c3_i32_89 = arith.constant 3 : i32
    %324 = arith.addi %299, %c3_i32_89 : i32
    %325 = arith.index_cast %324 : i32 to index
    %326 = memref.load %arg1[%325] : memref<40xi32, #tpu.memory_space<smem>>
    %327 = vector.broadcast %326 : i32 to vector<8x128xi32>
    %328 = arith.cmpi eq, %0, %327 : vector<8x128xi32>
    %c3_i32_90 = arith.constant 3 : i32
    %329 = arith.addi %299, %c3_i32_90 : i32
    %330 = vector.broadcast %329 : i32 to vector<8x128xi32>
    %331 = arith.select %328, %330, %298 : vector<8x128xi1>, vector<8x128xi32>
    %c10_i32 = arith.constant 10 : i32
    %332 = arith.maxsi %307, %315 : vector<8x128xi32>
    %333 = arith.maxsi %332, %323 : vector<8x128xi32>
    %334 = arith.maxsi %333, %331 : vector<8x128xi32>
    %c0_91 = arith.constant 0 : index
    %c0_92 = arith.constant 0 : index
    %335 = vector.load %arg3[%c0_91, %c0_92] : memref<8x128xi32, #tpu.memory_space<vmem>>, vector<8x128xi32>
    tpu.vector_store %arg3[%c0_91, %c0_92], %334 {strides = array<i32>} : memref<8x128xi32, #tpu.memory_space<vmem>>, vector<8x128xi32>,
    return
  }
  func.func @transform_0(%arg0: i32) -> i32 {
    %c0_i32 = arith.constant 0 : i32
    %c0_i32_0 = arith.constant 0 : i32
    return %c0_i32 : i32
  }
  func.func @transform_1(%arg0: i32) -> (i32, i32) {
    %c0_i32 = arith.constant 0 : i32
    %c0_i32_0 = arith.constant 0 : i32
    return %arg0, %c0_i32 : i32, i32
  }
  func.func @transform_2(%arg0: i32) -> (i32, i32) {
    %c0_i32 = arith.constant 0 : i32
    %c0_i32_0 = arith.constant 0 : i32
    return %arg0, %c0_i32 : i32, i32
  }
}

</mosaic_0001>

<bundles_post_ra>
// kernel: tpu_custom_call.1
= control target key start
LH: loop header
LB: loop body
LE: loop exit
PB: predicated region body
PF: predicated region fallthrough
CT: control target
= control target key end

     0   :  { %7 = vsyncpa [#allocation5], 0  ;;  %s1034_s0 = inlined_call_operand.hbm [shape: s32[40], index: 0, kind: input, shape index: {}]   ;;  %s1035_s1 = inlined_call_operand.hbm [shape: s32[16,128], index: 1, kind: input, shape index: {}]   ;;  %s1036_s2 = inlined_call_operand.hbm [shape: s32[16,128], index: 2, kind: output, shape index: {}]  }
   0x1   :  { %8 = vsyncpa [#allocation3], 0 }
   0x2   :  { %10 = vsyncpa [#allocation3 + $0x1], 0 }
   0x3   :  { %11 = vsyncpa [#allocation4], 0 }
   0x4   :  { %13 = vsyncpa [#allocation4 + $0x1], 0  ;;  %s674_s9 = smov 0   ;;  %s676_s10 = smov 0  }
   0x5   :  { %s678_s11 = smov 0   ;;  %s680_s12 = smov 0  }
   0x6 LB: > { %s695_s13 = sadd.s32 4294967295, %s653_s12   ;;  %s435_s14 = sadd.s32 4294967294, %s653_s12   ;;  %s653_s12 = sphi %s680_s12, %s1088_s12   ;;  %s649_s11 = sphi %s678_s11, %s1087_s11   ;;  %s645_s10 = sphi %s676_s10, %s1086_s10   ;;  %s641_s9 = sphi %s674_s9, %s1085_s9  }
   0x7   : > { %p60_p0 = scmp.ne.s32.totalorder %s645_s10, %s641_s9  ;;  %p1037_p1 = scmp.eq.s32.totalorder %s695_s13, 0 }
   0x8   : > { %p84_p2 = scmp.eq.s32.totalorder %s695_s13, 1  ;;  %p90_p3 = scmp.eq.s32.totalorder %s435_s14, 1 }
   0x9   : > { %p704_p4 = por %p1037_p1, %p60_p0  ;;  %p436_p5 = scmp.ge.s32.totalorder %s653_s12, 1 }
   0xa   : > { %p709_p6 = por %p90_p3, %p60_p0  ;;  %p97_p7 = scmp.lt.s32.totalorder %s653_s12, 3 }
   0xb   : > { %s1041_s15 = scalar_select %p704_p4, 1, 0 }
   0xc   : > { %s1042_s16 = scalar_select %p709_p6, 1, 0 }
   0xd   : > { %p714_p8 = pnand %p436_p5, %p97_p7  ;;  %s720_s18 = sadd.s32 1, %s653_s12  }
   0xe   : > { %s44_s19 = ssub.s32 %s653_s12, %s720_s18  ;;  %s47_s20 = sadd.s32 1, %s649_s11 }
   0xf   : > { %s1043_s17 = scalar_select %p714_p8, 1, 0 }
  0x10   : > { %p496_p10 = pneg %p714_p8  ;;  %p45_p12 = scmp.eq.s32.totalorder %s44_s19, 0 }
  0x11   : > { %p54_p13 = scmp.ne.s32.totalorder %s649_s11, %s645_s10  ;;  %p55_p0 = scmp.eq.s32.totalorder %s653_s12, 0 }
  0x12   : > { %p497_p11 = pnand %p496_p10, %p1037_p1  ;;  %p509_p3 = scmp.lt.s32.totalorder %s653_s12, 2 }
  0x13   : > { %s655_s21 = smov [#allocation2]   ;;  %p56_p5 = por %p55_p0, %p54_p13 }
  0x14   : > { %499 = dma.hbm_to_smem (!%p497_p11), %s1034_s0, 16, %s655_s21, [#allocation5]  }
  0x15   : > { %s737_s24 = scalar_select %p45_p12, %s649_s11, %s47_s20  }
  0x16   : > { %p741_p7 = por %p84_p2, %p54_p13  ;;  %s119_s26 = sand.u32 1, %s649_s11  }
  0x17   : > { %s440_s27 = sshll.u32 %s653_s12, 7  ;;  %s439_s28 = sshll.u32 %s119_s26, 3 }
  0x18   : > { %s1044_s25 = scalar_select %p741_p7, 1, 0 }
  0x19   : > { %s750_s3 = scalar_lea.hbm %s1035_s1, %s440_s27  ;;  %s123_s4 = scalar_lea.vmem [#allocation6], %s439_s28 }
  0x1a   : > { %s130_s5 = sshll.u32 %s123_s4, 4  ;;  %p752_p10 = pnand %p509_p3, %p56_p5  ;;  %s131_s5 = int_to_ptr.vmem [resolvable:$true] %s130_s5 }
  0x1b   : > { %s120_s7 = scalar_lea.sflag [#allocation3], %s119_s26  ;;  %s557_s8 = scalar_lea.hbm %s750_s3, 128 }
  0x1c   : > { %p558_p2 = scmp.ne.s32.totalorder %s750_s3, %s557_s8  ;;  %p559_p11 = pneg %p752_p10 }
  0x1d   : > { %s562_s20 = scalar_lea.hbm %s1035_s1, 256  ;;  %p563_p0 = scmp.lt.s32.totalorder %s750_s3, %s1035_s1 }
  0x1e   : > { %p560_p12 = pnand %p559_p11, %p558_p2  ;;  %p564_p3 = scmp.lt.s32.totalorder %s562_s20, %s557_s8 }
  0x20   : > { %p561_p13 = pneg %p560_p12  ;;  %p565_p5 = por %p564_p3, %p563_p0 }
  0x22   : > { %p566_p9 = pnand %p565_p5, %p561_p13 }
  0x24   : > { %569 = shalt.err (!%p566_p9)
}
  0x25   : > { %s570_s23 = scalar_lea.vmem %s131_s5, 128  ;;  %s656_s26 = smov [#allocation6]  }
  0x26   : > { %p571_p1 = scmp.ne.s32.totalorder %s131_s5, %s570_s23  ;;  %s575_s27 = sshll.u32 %s656_s26, 4  ;;  %s576_s27 = int_to_ptr.vmem [resolvable:$false] %s575_s27 }
  0x27   : > { %s577_s28 = scalar_lea.vmem %s576_s27, 256  ;;  %p578_p2 = scmp.lt.s32.totalorder %s131_s5, %s576_s27 }
  0x28   : > { %p573_p6 = pnand %p571_p1, %p559_p11  ;;  %p579_p12 = scmp.lt.s32.totalorder %s577_s28, %s570_s23 }
  0x2a   : > { %p574_p7 = pneg %p573_p6  ;;  %p580_p4 = por %p579_p12, %p578_p2 }
  0x2c   : > { %p581_p8 = pnand %p580_p4, %p574_p7 }
  0x2e   : > { %584 = shalt.err (!%p581_p8)
}
  0x2f   : > { %503 = dma.hbm_to_vmem [thread:$0]  (!%p752_p10), %s750_s3, 128, %s131_s5, %s120_s7  }
  0x30   : > { %p1046_p13 = scmp.ne.s32.totalorder %s1043_s17, 0 }
  0x31   : > { %p1047_p9 = scmp.eq.s32.totalorder (!%p1046_p13), %s695_s13, 0 }
  0x32   : > { %139 = sbr.rel (%p1046_p13) target bundleno = 127 (0x7f), region = 28 }
  0x37   : > { %628 = dma.done.wait (%p1047_p9), [#allocation5], 16   ;;  %p1048_p1 = pmov %p1047_p9 }
  0x38   : > { %s777_s29 = sand.u32 1, %s645_s10   ;;  %p1049_p4 = scmp.ne.s32.totalorder %s1041_s15, 0 }
  0x39   : > { %630 = vsyncadd (%p1048_p1), [#allocation5], 4294967280  ;;  %s443_s30 = sshll.u32 %s777_s29, 3  ;;  %s146_s4 = scalar_lea.sflag [#allocation3], %s777_s29 }
  0x3a   : > { %s149_s3 = scalar_lea.vmem [#allocation6], %s443_s30 }
  0x3b   : > { %632 = dma.done.wait (%p1049_p4), %s146_s4, 128  }
  0x3c   : > { %634 = vsyncadd (%p1049_p4), %s146_s4, 4294967168 }
  0x3d   : > { %154 = sfence }
  0x3e   : > { %s172_s17 = sld [smem:[#allocation2]]  ;;  %v795_v0 = vld [vmem:[%s149_s3] sm:$0xff]  ;;  %v657_v8 = vmov 4294967295   ;;  %p1082_p8 = scmp.ne.s32.totalorder %s1044_s25, 0 }
  0x3f   : > { %s445_s5 = sld [smem:[#allocation2 + $0x1]] }
  0x40   : > { %s446_s6 = sld [smem:[#allocation2 + $0x2]] }
  0x41   : > { %s447_s7 = sld [smem:[#allocation2 + $0x3]] }
  0x42   : > { %s448_s8 = sld [smem:[#allocation2 + $0x4]] }
  0x43   : > { %s449_s14 = sld [smem:[#allocation2 + $0x5]] }
  0x44   : > { %s787_s19 = sld [smem:[#allocation2 + $0x6]]  ;;  %v173_v1 = vstv %s172_s17 }
  0x45   : > { %s789_s20 = sld [smem:[#allocation2 + $0x7]]  ;;  %v177_v2 = vstv %s445_s5  ;;  %vm174_vm0 = vcmp.eq.s32.totalorder %v795_v0, %v173_v1 }
  0x46   : > { %s791_s21 = sld [smem:[#allocation2 + $0x8]]  ;;  %v181_v3 = vstv %s446_s6  ;;  %vm178_vm1 = vcmp.eq.s32.totalorder %v795_v0, %v177_v2  ;;  %v175_v9 = vsel %vm174_vm0, 0, %v657_v8 }
  0x47   : > { %s793_s22 = sld [smem:[#allocation2 + $0x9]]  ;;  %v185_v4 = vstv %s447_s7  ;;  %vm182_vm2 = vcmp.eq.s32.totalorder %v795_v0, %v181_v3  ;;  %v179_v13 = vsel %vm178_vm1, 1, %v657_v8 }
  0x48   : > { %s797_s15 = sld [smem:[#allocation2 + $0xa]]  ;;  %v189_v5 = vstv %s448_s8  ;;  %vm186_vm3 = vcmp.eq.s32.totalorder %v795_v0, %v185_v4  ;;  %v183_v16 = vsel %vm182_vm2, 2, %v657_v8 }
  0x49   : > { %s799_s23 = sld [smem:[#allocation2 + $0xb]]  ;;  %v193_v6 = vstv %s449_s14  ;;  %vm815_vm4 = vcmp.eq.s32.totalorder %v795_v0, %v189_v5  ;;  %v187_v17 = vsel %vm186_vm3, 3, %v657_v8 }
  0x4a   : > { %s801_s26 = sld [smem:[#allocation2 + $0xc]]  ;;  %v197_v7 = vstv %s787_s19  ;;  %vm824_vm5 = vcmp.eq.s32.totalorder %v795_v0, %v193_v6  ;;  %v191_v20 = vsel %vm815_vm4, 4, %v175_v9 }
  0x4b   : > { %s804_s27 = sld [smem:[#allocation2 + $0xd]]  ;;  %v201_v11 = vstv %s789_s20  ;;  %vm832_vm6 = vcmp.eq.s32.totalorder %v795_v0, %v197_v7  ;;  %v195_v23 = vsel %vm824_vm5, 5, %v179_v13 }
  0x4c   : > { %s807_s28 = sld [smem:[#allocation2 + $0xe]]  ;;  %v205_v12 = vstv %s791_s21  ;;  %vm842_vm7 = vcmp.eq.s32.totalorder %v795_v0, %v201_v11  ;;  %v199_v26 = vsel %vm832_vm6, 6, %v183_v16 }
  0x4d   : > { %s812_s4 = sld [smem:[#allocation2 + $0xf]]  ;;  %v209_v15 = vstv %s793_s22  ;;  %vm206_vm8 = vcmp.eq.s32.totalorder %v795_v0, %v205_v12  ;;  %v203_v28 = vsel %vm842_vm7, 7, %v187_v17 }
  0x4e   : > { %s821_s3 = sld [smem:[#allocation2 + $0x10]]  ;;  %v213_v19 = vstv %s797_s15  ;;  %vm210_vm9 = vcmp.eq.s32.totalorder %v795_v0, %v209_v15  ;;  %v207_v29 = vsel %vm206_vm8, 8, %v191_v20 }
  0x4f   : > { %s829_s17 = sld [smem:[#allocation2 + $0x11]]  ;;  %v217_v22 = vstv %s799_s23  ;;  %vm214_vm10 = vcmp.eq.s32.totalorder %v795_v0, %v213_v19  ;;  %v211_v31 = vsel %vm210_vm9, 9, %v195_v23 }
  0x50   : > { %s837_s5 = sld [smem:[#allocation2 + $0x12]]  ;;  %v221_v24 = vstv %s801_s26  ;;  %vm218_vm11 = vcmp.eq.s32.totalorder %v795_v0, %v217_v22  ;;  %v215_v35 = vsel %vm214_vm10, 10, %v199_v26 }
  0x51   : > { %s848_s6 = sld [smem:[#allocation2 + $0x13]]  ;;  %v225_v25 = vstv %s804_s27  ;;  %vm870_vm12 = vcmp.eq.s32.totalorder %v795_v0, %v221_v24  ;;  %v219_v39 = vsel %vm218_vm11, 11, %v203_v28 }
  0x52   : > { %s855_s7 = sld [smem:[#allocation2 + $0x14]]  ;;  %v229_v27 = vstv %s807_s28  ;;  %vm875_vm13 = vcmp.eq.s32.totalorder %v795_v0, %v225_v25  ;;  %v223_v42 = vsel %vm870_vm12, 12, %v207_v29 }
  0x53   : > { %s861_s8 = sld [smem:[#allocation2 + $0x15]]  ;;  %v233_v30 = vstv %s812_s4  ;;  %vm883_vm14 = vcmp.eq.s32.totalorder %v795_v0, %v229_v27  ;;  %v227_v43 = vsel %vm875_vm13, 13, %v211_v31 }
  0x54   : > { %s867_s14 = sld [smem:[#allocation2 + $0x16]]  ;;  %v237_v34 = vstv %s821_s3  ;;  %vm892_vm15 = vcmp.eq.s32.totalorder %v795_v0, %v233_v30  ;;  %v231_v45 = vsel %vm883_vm14, 14, %v215_v35 }
  0x55   : > { %s880_s19 = sld [smem:[#allocation2 + $0x17]]  ;;  %v241_v37 = vstv %s829_s17  ;;  %vm238_vm0 = vcmp.eq.s32.totalorder %v795_v0, %v237_v34  ;;  %v235_v47 = vsel %vm892_vm15, 15, %v219_v39 }
  0x56   : > { %v245_v38 = vstv %s837_s5  ;;  %s889_s20 = sld [smem:[#allocation2 + $0x18]]  ;;  %vm242_vm1 = vcmp.eq.s32.totalorder %v795_v0, %v241_v37  ;;  %v239_v49 = vsel %vm238_vm0, 16, %v223_v42 }
  0x57   : > { %v249_v41 = vstv %s848_s6  ;;  %s897_s21 = sld [smem:[#allocation2 + $0x19]]  ;;  %vm246_vm2 = vcmp.eq.s32.totalorder %v795_v0, %v245_v38  ;;  %v243_v52 = vsel %vm242_vm1, 17, %v227_v43 }
  0x58   : > { %v253_v44 = vstv %s855_s7  ;;  %s905_s22 = sld [smem:[#allocation2 + $0x1a]]  ;;  %vm250_vm3 = vcmp.eq.s32.totalorder %v795_v0, %v249_v41  ;;  %v247_v53 = vsel %vm246_vm2, 18, %v231_v45 }
  0x59   : > { %v257_v46 = vstv %s861_s8  ;;  %s912_s15 = sld [smem:[#allocation2 + $0x1b]]  ;;  %vm919_vm4 = vcmp.eq.s32.totalorder %v795_v0, %v253_v44  ;;  %v251_v56 = vsel %vm250_vm3, 19, %v235_v47 }
  0x5a   : > { %v261_v48 = vstv %s867_s14  ;;  %s472_s23 = sld [smem:[#allocation2 + $0x1c]]  ;;  %vm925_vm5 = vcmp.eq.s32.totalorder %v795_v0, %v257_v46  ;;  %v255_v60 = vsel %vm919_vm4, 20, %v239_v49 }
  0x5b   : > { %v265_v51 = vstv %s880_s19  ;;  %s473_s26 = sld [smem:[#allocation2 + $0x1d]]  ;;  %vm931_vm6 = vcmp.eq.s32.totalorder %v795_v0, %v261_v48  ;;  %v259_v62 = vsel %vm925_vm5, 21, %v243_v52  ;;  %s485_s19 = sshll.u32 %s695_s13, 7 }
  0x5c   : > { %v269_v55 = vstv %s889_s20  ;;  %s474_s27 = sld [smem:[#allocation2 + $0x1e]]  ;;  %vm936_vm7 = vcmp.eq.s32.totalorder %v795_v0, %v265_v51  ;;  %v263_v1 = vsel %vm931_vm6, 22, %v247_v53  ;;  %s170_s20 = scalar_lea.vmem [#allocation7], %s443_s30 }
  0x5d   : > { %v273_v59 = vstv %s897_s21  ;;  %s475_s28 = sld [smem:[#allocation2 + $0x1f]]  ;;  %vm270_vm8 = vcmp.eq.s32.totalorder %v795_v0, %v269_v55  ;;  %v267_v2 = vsel %vm936_vm7, 23, %v251_v56  ;;  %s353_s21 = sshll.u32 %s170_s20, 4  ;;  %s354_s21 = int_to_ptr.vmem [resolvable:$true] %s353_s21 }
  0x5e   : > { %v277_v61 = vstv %s905_s22  ;;  %s476_s4 = sld [smem:[#allocation2 + $0x20]]  ;;  %vm274_vm9 = vcmp.eq.s32.totalorder %v795_v0, %v273_v59  ;;  %v271_v4 = vsel %vm270_vm8, 24, %v255_v60  ;;  %s658_s13 = smov [#allocation7]  }
  0x5f   : > { %v281_v63 = vstv %s912_s15  ;;  %s477_s3 = sld [smem:[#allocation2 + $0x21]]  ;;  %vm278_vm10 = vcmp.eq.s32.totalorder %v795_v0, %v277_v61  ;;  %v275_v7 = vsel %vm274_vm9, 25, %v259_v62  ;;  %s589_s30 = sshll.u32 %s658_s13, 4  ;;  %s590_s30 = int_to_ptr.vmem [resolvable:$false] %s589_s30 }
  0x60   : > { %v285_v3 = vstv %s472_s23  ;;  %s478_s17 = sld [smem:[#allocation2 + $0x22]]  ;;  %vm282_vm11 = vcmp.eq.s32.totalorder %v795_v0, %v281_v63  ;;  %v279_v10 = vsel %vm278_vm10, 26, %v263_v1  ;;  %s997_s23 = scalar_lea.hbm %s1036_s2, %s485_s19 }
  0x61   : > { %vm956_vm12 = vcmp.eq.s32.totalorder %v795_v0, %v285_v3  ;;  %v289_v6 = vstv %s473_s26  ;;  %s479_s5 = sld [smem:[#allocation2 + $0x23]]  ;;  %v283_v13 = vsel %vm282_vm11, 27, %v267_v2  ;;  %s340_s26 = scalar_lea.sflag [#allocation4], %s777_s29 }
  0x62   : > { %vm961_vm13 = vcmp.eq.s32.totalorder %v795_v0, %v289_v6  ;;  %v293_v9 = vstv %s474_s27  ;;  %s480_s6 = sld [smem:[#allocation2 + $0x24]]  ;;  %v287_v14 = vsel %vm956_vm12, 28, %v271_v4  ;;  %s585_s27 = scalar_lea.vmem %s354_s21, 128 }
  0x63   : > { %vm966_vm14 = vcmp.eq.s32.totalorder %v795_v0, %v293_v9  ;;  %v297_v12 = vstv %s475_s28  ;;  %s481_s7 = sld [smem:[#allocation2 + $0x25]]  ;;  %v291_v17 = vsel %vm961_vm13, 29, %v275_v7  ;;  %p586_p6 = scmp.ne.s32.totalorder %s354_s21, %s585_s27 }
  0x64   : > { %vm973_vm15 = vcmp.eq.s32.totalorder %v795_v0, %v297_v12  ;;  %v301_v16 = vstv %s476_s4  ;;  %s482_s8 = sld [smem:[#allocation2 + $0x26]]  ;;  %v295_v19 = vsel %vm966_vm14, 30, %v279_v10  ;;  %s591_s28 = scalar_lea.vmem %s590_s30, 256 }
  0x65   : > { %vm302_vm0 = vcmp.eq.s32.totalorder %v795_v0, %v301_v16  ;;  %v305_v18 = vstv %s477_s3  ;;  %s483_s14 = sld [smem:[#allocation2 + $0x27]]  ;;  %v299_v21 = vsel %vm973_vm15, 31, %v283_v13  ;;  %p587_p7 = pnand %p586_p6, %p1082_p8 }
  0x66   : > { %vm306_vm1 = vcmp.eq.s32.totalorder %v795_v0, %v305_v18  ;;  %v309_v20 = vstv %s478_s17  ;;  %v303_v22 = vsel %vm302_vm0, 32, %v287_v14  ;;  %p592_p11 = scmp.lt.s32.totalorder %s354_s21, %s590_s30  ;;  %p593_p0 = scmp.lt.s32.totalorder %s591_s28, %s585_s27 }
  0x67   : > { %vm310_vm2 = vcmp.eq.s32.totalorder %v795_v0, %v309_v20  ;;  %v313_v23 = vstv %s479_s5  ;;  %v307_v24 = vsel %vm306_vm1, 33, %v291_v17  ;;  %p588_p10 = pneg %p587_p7 }
  0x68   : > { %vm314_vm3 = vcmp.eq.s32.totalorder %v795_v0, %v313_v23  ;;  %v317_v25 = vstv %s480_s6  ;;  %v311_v26 = vsel %vm310_vm2, 34, %v295_v19  ;;  %p594_p3 = por %p593_p0, %p592_p11 }
  0x69   : > { %vm318_vm4 = vcmp.eq.s32.totalorder %v795_v0, %v317_v25  ;;  %v321_v27 = vstv %s481_s7  ;;  %v315_v28 = vsel %vm314_vm3, 35, %v299_v21 }
  0x6a   : > { %v319_v29 = vsel %vm318_vm4, 36, %v303_v22  ;;  %vm322_vm5 = vcmp.eq.s32.totalorder %v795_v0, %v321_v27  ;;  %v325_v30 = vstv %s482_s8  ;;  %p595_p5 = pnand %p594_p3, %p588_p10 }
  0x6b   : > { %v323_v31 = vsel %vm322_vm5, 37, %v307_v24  ;;  %vm326_vm6 = vcmp.eq.s32.totalorder %v795_v0, %v325_v30  ;;  %v329_v32 = vstv %s483_s14 }
  0x6c   : > { %v327_v33 = vsel %vm326_vm6, 38, %v311_v26  ;;  %vm330_vm7 = vcmp.eq.s32.totalorder %v795_v0, %v329_v32  ;;  %vm332_vm8 = vcmp.gt.s32.totalorder %v319_v29, %v323_v31 }
  0x6d   : > { %v331_v34 = vsel %vm330_vm7, 39, %v315_v28  ;;  %v333_v35 = vsel %vm332_vm8, %v319_v29, %v323_v31 }
  0x6e   : > { %vm334_vm9 = vcmp.gt.s32.totalorder %v333_v35, %v327_v33 }
  0x6f   : > { %v335_v36 = vsel %vm334_vm9, %v333_v35, %v327_v33 }
  0x70   : > { %vm336_vm10 = vcmp.gt.s32.totalorder %v335_v36, %v331_v34 }
  0x71   : > { %v337_v37 = vsel %vm336_vm10, %v335_v36, %v331_v34 }
  0x72   : > { %338 = vst [vmem:[%s170_s20] sm:$0xff] %v337_v37 }
  0x73   : > { %598 = shalt.err (!%p595_p5)
}
  0x74   : > { %s599_s4 = scalar_lea.hbm %s997_s23, 128  ;;  %s603_s17 = scalar_lea.hbm %s1036_s2, 256 }
  0x75   : > { %p600_p2 = scmp.ne.s32.totalorder %s997_s23, %s599_s4  ;;  %p604_p9 = scmp.lt.s32.totalorder %s997_s23, %s1036_s2 }
  0x76   : > { %p605_p1 = scmp.lt.s32.totalorder %s603_s17, %s599_s4 }
  0x77   : > { %p601_p12 = pnand %p600_p2, %p1082_p8 }
  0x78   : > { %p606_p4 = por %p605_p1, %p604_p9 }
  0x79   : > { %p602_p13 = pneg %p601_p12 }
  0x7b   : > { %p607_p6 = pnand %p606_p4, %p602_p13 }
  0x7d   : > { %610 = shalt.err (!%p607_p6)
}
  0x7e   : > { %494 = dma.vmem_to_hbm [thread:$0]  (%p1082_p8), %s354_s21, 128, %s997_s23, %s340_s26  }
  0x7f PF: > { %s365_s7 = sand.u32 1, %s641_s9   ;;  %p1083_p7 = scmp.ne.s32.totalorder %s1042_s16, 0 }
  0x80   : > { %p1084_p10 = scmp.ge.s32.totalorder %s653_s12, 2  ;;  %s366_s8 = scalar_lea.sflag [#allocation4], %s365_s7 }
  0x82   : > { %p505_p11 = pnand %p1084_p10, %p1083_p7 }
  0x84   : > { %p506_p0 = pneg %p505_p11 }
  0x86   : > { %636 = dma.done.wait (%p506_p0), %s366_s8, 128  }
  0x87   : > { %638 = vsyncadd (%p506_p0), %s366_s8, 4294967168  ;;  %p16_p3 = scmp.ge.s32.totalorder %s720_s18, 4   ;;  %s1085_s9 = smov %s645_s10 }
  0x88   : > { %s1086_s10 = smov %s649_s11  ;;  %s1087_s11 = smov %s737_s24 }
  0x89   : > { %s1088_s12 = smov %s720_s18  ;;  %18 = sbr.rel (!%p16_p3) target bundleno = 6 (0x6), region = 78 }
  0x8e   :  { %371 = vsyncpa [#allocation3], 1 }
  0x8f   :  { %373 = vsyncpa [#allocation3 + $0x1], 1 }
  0x90   :  { %374 = vsyncpa [#allocation4], 1 }
  0x91   :  { %376 = vsyncpa [#allocation4 + $0x1], 1 }
  0x92   :  { %377 = vsyncpa [#allocation5], 1 }
  0x93   :  { %379 = vsyncpa [#allocation5 + $0x1], 1 }

</bundles_post_ra>
